<compile_context>
chip_gen: v7x
topology: tpu7x:2x2x1
jax: 0.10.0
libtpu: 0.0.40
codegen_flags: <defaults>
</compile_context>

<pallas_src>
import jax
import jax.numpy as jnp
from jax.experimental import pallas as pl
from jax.experimental.pallas import tpu as pltpu


def _round_up(x: int, m: int) -> int:
    return ((x + m - 1) // m) * m


# ---------------------------------------------------------------------------
# Path 1: tiny vocab -> one-hot @ table on the MXU (table resident in VMEM).
# ---------------------------------------------------------------------------
def _onehot_kernel(ids_ref, table_ref, out_ref):
    # ids_ref  : (TN, 1)  int32   token ids for this tile
    # table_ref: (V, E)   full table, resident in VMEM once
    # out_ref  : (TN, E)  gathered embeddings
    ids = ids_ref[...]                                        # (TN, 1)
    tn = out_ref.shape[0]
    v = table_ref.shape[0]
    col = jax.lax.broadcasted_iota(jnp.int32, (tn, v), 1)     # (TN, V)
    onehot = (col == ids).astype(table_ref.dtype)             # exact 0/1 weights
    out_ref[...] = jnp.dot(
        onehot, table_ref[...], preferred_element_type=jnp.float32
    ).astype(out_ref.dtype)


# Raise v5e's 16 MiB scoped-VMEM default; safe on v6e (128 MiB) and v7x (64 MiB).
_ONEHOT_VMEM_LIMIT = 32 * 1024 * 1024
# Working-set budget (excluding the <=4 MiB resident table) used to clamp tile_n.
_ONEHOT_WORKSET_BUDGET = 20 * 1024 * 1024


def _pick_onehot_tile_n(n, vocab, emb, itemsize, tile_n):
    if tile_n is None:
        # Large token tiles: at 128/256 the kernel is bound by the ~0.35us/step
        # pipeline overhead, not the MXU.
        tile_n = 512
    tile_n = max(8, _round_up(min(tile_n, _round_up(n, 8)), 8))

    def workset(t):
        onehot = t * vocab * itemsize        # one-hot operand
        iota = t * vocab * 4                 # int32 iota intermediate
        out = 2 * t * emb * itemsize         # double-buffered output block
        acc = t * emb * 4                    # f32 matmul result
        ids = 2 * t * 4
        return onehot + iota + out + acc + ids

    # Shrink until the working set fits the per-generation VMEM budget
    # (binding constraint: v5e scoped default / v7x 64 MiB physical).
    while tile_n > 8 and workset(tile_n) > _ONEHOT_WORKSET_BUDGET:
        tile_n = max(8, tile_n // 2)
    return tile_n


def _embedding_onehot(ids, table, tile_n):
    n = ids.shape[0]
    vocab_size, embedding_size = table.shape
    # NOTE: the table is intentionally NOT padded to a 128 multiple per call —
    # a full-array VMEM block is exempt from the (8,128) rule and the MXU
    # handles a partial final contraction pass; padding here would re-copy the
    # whole table in HBM on every forward.

    tile_n = _pick_onehot_tile_n(
        n, vocab_size, embedding_size, table.dtype.itemsize, tile_n)

    n_pad = _round_up(n, tile_n)
    ids = jnp.pad(ids, (0, n_pad - n))          # padded ids are valid (id 0)
    ids_2d = ids.reshape(n_pad, 1)

    out = pl.pallas_call(
        _onehot_kernel,
        out_shape=jax.ShapeDtypeStruct((n_pad, embedding_size), table.dtype),
        grid=(n_pad // tile_n,),
        in_specs=[
            pl.BlockSpec((tile_n, 1), lambda i: (i, 0)),
            # Whole table lives in VMEM for the kernel's duration: it is constant
            # across grid steps, so keep a single copy (no pipeline buffers).
            pl.BlockSpec(memory_space=pltpu.MemorySpace.VMEM),
        ],
        out_specs=pl.BlockSpec((tile_n, embedding_size), lambda i: (i, 0)),
        compiler_params=pltpu.CompilerParams(
            dimension_semantics=("parallel",),
            vmem_limit_bytes=_ONEHOT_VMEM_LIMIT,
        ),
    )(ids_2d, table)
    return out[:n]


# ---------------------------------------------------------------------------
# Path 2: general vocab -> manual-DMA row gather (P4, double-buffered).
# ---------------------------------------------------------------------------
_GATHER_ROWS = 32    # rows per DMA batch (>=8 f32 / >=16 bf16 / >=32 int8 packing)
_GATHER_CHUNK = 256  # tokens per grid step (amortizes the ~0.35us/step overhead)
_GATHER_VMEM_LIMIT = 32 * 1024 * 1024


def _gather_kernel(ids_ref, table_hbm, out_ref, buf, sems):
    # ids_ref   : (Np,)          int32 in SMEM (scalar-prefetched)
    # table_hbm : (V, E)         raw HBM ref (memory_space=pl.ANY)
    # out_ref   : (CHUNK, E)     output block in VMEM
    # buf       : (2, ROWS, E)   VMEM double buffer for gathered rows
    # sems      : (2, ROWS)      DMA semaphores
    chunk = out_ref.shape[0]
    rows = buf.shape[1]
    n_steps = chunk // rows
    base = pl.program_id(0) * chunk

    def issue(step, slot):
        off = base + step * rows
        for r in range(rows):
            tok = ids_ref[off + r]
            pltpu.make_async_copy(
                table_hbm.at[pl.ds(tok, 1), :],
                buf.at[slot, pl.ds(r, 1), :],
                sems.at[slot, r],
            ).start()

    def wait(slot):
        for r in range(rows):
            pltpu.make_async_copy(
                table_hbm.at[pl.ds(0, 1), :],        # same-shape descriptor for wait
                buf.at[slot, pl.ds(r, 1), :],
                sems.at[slot, r],
            ).wait()

    issue(0, 0)                                      # prime slot 0
    for step in range(n_steps):                      # static unroll (n_steps <= 8)
        slot = step & 1
        if step + 1 < n_steps:
            issue(step + 1, 1 - slot)                # keep next batch in flight
        wait(slot)
        # Single unmasked (ROWS, E) store instead of ROWS 1-row masked stores.
        out_ref[pl.ds(step * rows, rows), :] = buf[slot]


def _embedding_gather(ids, table):
    n = ids.shape[0]
    _, embedding_size = table.shape
    rows = _GATHER_ROWS

    # Token chunk per grid step; keep the double-buffered output block modest so
    # large E still fits comfortably in scoped VMEM on every generation.
    chunk = _GATHER_CHUNK
    while (chunk > rows and
           2 * chunk * embedding_size * table.dtype.itemsize > 8 * 1024 * 1024):
        chunk //= 2
    chunk = max(rows, min(chunk, _round_up(n, rows)))

    n_pad = _round_up(n, chunk)
    ids = jnp.pad(ids, (0, n_pad - n))          # padded ids are valid (id 0)

    out = pl.pallas_call(
        _gather_kernel,
        out_shape=jax.ShapeDtypeStruct((n_pad, embedding_size), table.dtype),
        grid_spec=pltpu.PrefetchScalarGridSpec(
            num_scalar_prefetch=1,
            grid=(n_pad // chunk,),
            in_specs=[pl.BlockSpec(memory_space=pl.ANY)],     # table stays in HBM
            out_specs=pl.BlockSpec(
                (chunk, embedding_size), lambda i, ids_ref: (i, 0)),
            scratch_shapes=[
                pltpu.VMEM((2, rows, embedding_size), table.dtype),
                pltpu.SemaphoreType.DMA((2, rows)),
            ],
        ),
        compiler_params=pltpu.CompilerParams(
            # Every grid step is self-contained (all DMAs waited in-step), so the
            # axis is safely "parallel" -> v7x shards it across both TensorCores.
            dimension_semantics=("parallel",),
            vmem_limit_bytes=_GATHER_VMEM_LIMIT,
        ),
    )(ids, table)
    return out[:n]


# ---------------------------------------------------------------------------
# Public forward.
# ---------------------------------------------------------------------------
def embedding_forward(x, table, *, tile_n=None, onehot_vocab_limit=1024,
                      validate=False):
    """Pallas equivalent of Embedding.forward: returns table[x].

    Args:
      x: integer array of token ids, shape (...,).
      table: (vocab_size, embedding_size) embedding matrix.
      tile_n: token-tile size for the one-hot path (default 512, auto-shrunk to
        fit the VMEM budget).
      onehot_vocab_limit: max vocab for the MXU one-hot path; larger vocabs use
        the manual-DMA row-gather path.
      validate: if True, run the (host-blocking, eager-only) range check and
        raise IndexError like the PyTorch module.  Not usable under jax.jit.

    Returns:
      Array of shape (*x.shape, embedding_size).
    """
    vocab_size, embedding_size = table.shape

    if validate:
        # TODO(synk): torch raises IndexError for out-of-range ids; this check is
        # host-blocking and raises ConcretizationTypeError under jit, so opt-in.
        if bool(jnp.any(x < 0)) or bool(jnp.any(x >= vocab_size)):
            raise IndexError("Token ids are outside of the range [0, vocab_size).")

    orig_shape = x.shape
    ids = jnp.reshape(x, (-1,)).astype(jnp.int32)
    # Clamp so malformed ids can never index out of bounds inside the kernel
    # (jit path: out-of-range ids map to row 0 / V-1 instead of raising).
    ids = jnp.clip(ids, 0, vocab_size - 1)

    table_bytes = vocab_size * embedding_size * table.dtype.itemsize
    if vocab_size <= onehot_vocab_limit and table_bytes <= 4 * 1024 * 1024:
        out = _embedding_onehot(ids, table, tile_n)
    else:
        out = _embedding_gather(ids, table)

    return out.reshape(*orig_shape, embedding_size)


if __name__ == "__main__":
    key = jax.random.PRNGKey(0)
    k_table, k_ids, k_big_table, k_big_ids = jax.random.split(key, 4)

    # Small model (exercises the one-hot / MXU path): vocab=64, E=128, ids (2, 8).
    vocab_size, embedding_size = 64, 128
    table = jax.random.normal(
        k_table, (vocab_size, embedding_size), dtype=jnp.float32)
    x = jax.random.randint(k_ids, (2, 8), 0, vocab_size, dtype=jnp.int32)

    out = jax.block_until_ready(embedding_forward(x, table))
    ref = table[x]
    assert out.shape == (2, 8, embedding_size)
    assert jnp.allclose(out, ref, atol=1e-5), "mismatch vs reference (one-hot path)"

    # Larger vocab (exercises the manual-DMA row-gather path).
    big_vocab = 4096
    big_table = jax.random.normal(
        k_big_table, (big_vocab, embedding_size), dtype=jnp.float32)
    xb = jax.random.randint(k_big_ids, (3, 7), 0, big_vocab, dtype=jnp.int32)

    outb = jax.block_until_ready(embedding_forward(xb, big_table))
    refb = big_table[xb]
    assert outb.shape == (3, 7, embedding_size)
    assert jnp.allclose(outb, refb), "mismatch vs reference (gather path)"

    print("KERNEL_OK")
</pallas_src>

<mosaic_0001>
module attributes {stable_mosaic.version = 11 : i64} {
  func.func @_onehot_kernel(%arg0: i32, %arg1: memref<16x1xi32, #tpu.memory_space<vmem>>, %arg2: memref<64x128xf32, #tpu.memory_space<vmem>>, %arg3: memref<16x128xf32, #tpu.memory_space<vmem>>) attributes {dimension_semantics = [#tpu.dimension_semantics<parallel>], iteration_bounds = array<i64: 1>, scalar_prefetch = 0 : i64, scratch_operands = 0 : i64, tpu.core_type = #tpu.core_type<tc>, window_params = [{transform_indices = @transform_0, window_bounds = array<i64: 16, 1>}, {pipeline_mode = #tpu.pipeline_mode<synchronous>, transform_indices = @transform_1, window_bounds = array<i64: 64, 128>}, {transform_indices = @transform_2, window_bounds = array<i64: 16, 128>}]} {
    %c0 = arith.constant 0 : index
    %c0_0 = arith.constant 0 : index
    %0 = vector.load %arg1[%c0, %c0_0] : memref<16x1xi32, #tpu.memory_space<vmem>>, vector<16x1xi32>
    %1 = tpu.iota {dimensions = array<i32: 1>} : vector<16x64xi32>
    %2 = vector.broadcast %0 : vector<16x1xi32> to vector<16x64xi32>
    %3 = arith.cmpi eq, %1, %2 : vector<16x64xi32>
    %4 = arith.extui %3 : vector<16x64xi1> to vector<16x64xi32>
    %5 = arith.sitofp %4 : vector<16x64xi32> to vector<16x64xf32>
    %c0_1 = arith.constant 0 : index
    %c0_2 = arith.constant 0 : index
    %6 = vector.load %arg2[%c0_1, %c0_2] : memref<64x128xf32, #tpu.memory_space<vmem>>, vector<64x128xf32>
    %cst = arith.constant dense<0.000000e+00> : vector<16x128xf32>
    %7 = tpu.matmul %5, %6, %cst {dimension_numbers = #tpu.dot_dimension_numbers<[1], [0], [0], [1], [0, 0, 1, 1], [], []>} : vector<16x64xf32>, vector<64x128xf32>, vector<16x128xf32> -> vector<16x128xf32>
    %c0_3 = arith.constant 0 : index
    %c0_4 = arith.constant 0 : index
    %8 = vector.load %arg3[%c0_3, %c0_4] : memref<16x128xf32, #tpu.memory_space<vmem>>, vector<16x128xf32>
    tpu.vector_store %arg3[%c0_3, %c0_4], %7 {strides = array<i32>} : memref<16x128xf32, #tpu.memory_space<vmem>>, vector<16x128xf32>,
    return
  }
  func.func @transform_0(%arg0: i32) -> (i32, i32) {
    %c0_i32 = arith.constant 0 : i32
    %c0_i32_0 = arith.constant 0 : i32
    return %arg0, %c0_i32 : i32, i32
  }
  func.func @transform_1(%arg0: i32) -> (i32, i32) {
    %c0_i32 = arith.constant 0 : i32
    %c0_i32_0 = arith.constant 0 : i32
    %c0_i32_1 = arith.constant 0 : i32
    return %c0_i32, %c0_i32_0 : i32, i32
  }
  func.func @transform_2(%arg0: i32) -> (i32, i32) {
    %c0_i32 = arith.constant 0 : i32
    %c0_i32_0 = arith.constant 0 : i32
    return %arg0, %c0_i32 : i32, i32
  }
}

</mosaic_0001>

<bundles_post_ra>
// kernel: tpu_custom_call.1
= control target key start
LH: loop header
LB: loop body
LE: loop exit
PB: predicated region body
PF: predicated region fallthrough
CT: control target
= control target key end

     0   :  { %7 = vsyncpa [#allocation3], 0  ;;  %s312_s0 = inlined_call_operand.vmem [shape: s32[16,1], index: 0, kind: input, shape index: {}]   ;;  %s313_s1 = inlined_call_operand.hbm [shape: f32[64,128], index: 1, kind: input, shape index: {}]   ;;  %s314_s2 = inlined_call_operand.hbm [shape: f32[16,128], index: 2, kind: output, shape index: {}]  }
   0x1   :  { %8 = vsyncpa [#allocation4], 0  ;;  %s255_s9 = smov [#allocation2]   ;;  %s207_s13 = scalar_lea.hbm %s313_s1, 1024 }
   0x2   :  { %s16_s10 = sshll.u32 %s255_s9, 4  ;;  %p208_p0 = scmp.ne.s32.totalorder %s313_s1, %s207_s13  ;;  %s17_s10 = int_to_ptr.vmem [resolvable:$true] %s16_s10 }
   0x3   :  { %p211_p1 = scmp.lt.u32.totalorder %s207_s13, %s313_s1 }
   0x5   :  { %p213_p2 = pnand %p211_p1, %p208_p0 }
   0x7   :  { %216 = shalt.err (!%p213_p2)
}
   0x8   :  { %s217_s18 = scalar_lea.vmem %s17_s10, 1024  ;;  %p222_p4 = scmp.lt.s32.totalorder %s17_s10, %s17_s10 }
   0x9   :  { %p218_p3 = scmp.ne.s32.totalorder %s17_s10, %s217_s18  ;;  %p223_p5 = scmp.lt.s32.totalorder %s217_s18, %s217_s18 }
   0xb   :  { %p224_p6 = por %p223_p5, %p222_p4 }
   0xd   :  { %p225_p7 = pnand %p224_p6, %p218_p3 }
   0xf   :  { %228 = shalt.err (!%p225_p7)
}
  0x10   :  { %s256_s19 = smov 128   ;;  %s257_s20 = smov 8  }
  0x11   :  { %22 = dma.hbm_to_vmem [thread:$0]  %s313_s1, 1024, %s17_s10, [#allocation3], %s256_s19, %s256_s19, %s257_s20  }
  0x12   :  { %251 = dma.done.wait [#allocation3], 1024  }
  0x13   :  { %252 = vsyncadd [#allocation3], 4294966272  ;;  %v258_v0 = vmov 0   ;;  %v26_v1 = vld [vmem:[%s312_s0] sm:$0xff]  ;;  %v43_v3 = vld [vmem:[#allocation2 + $0x8] sm:$0xff]  ;;  %v28_v15 = vlaneseq  ;;  %vm50_vm0 = vcmask 523264  }
  0x14   :  { %206 = vset.pattern.permute.xlu0 %v258_v0  ;;  %v42_v2 = vld [vmem:[#allocation2] sm:$0xff]  ;;  %v44_v4 = vld [vmem:[#allocation2 + $0x10] sm:$0xff]  ;;  %v45_v5 = vld [vmem:[#allocation2 + $0x18] sm:$0xff]  ;;  %v259_v18 = vmov 0.0  }
  0x15   :  { %31 = vperm.xlu0 %206, %v26_v1   ;;  %v27_v6 = vld [vmem:[%s312_s0 + $0x8] sm:$0xff]  ;;  %v184_v7 = vpack.c.bf16 %v43_v3, %v42_v2  ;;  %v188_v8 = vpack.c.bf16 %v45_v5, %v44_v4  ;;  %v46_v9 = vld [vmem:[#allocation2 + $0x20] sm:$0xff]  ;;  %v48_v12 = vld [vmem:[#allocation2 + $0x30] sm:$0xff]  ;;  %v29_v16 = vand.u32 127, %v28_v15  ;;  %s260_s0 = smov [#allocation5]  }
  0x16   :  { %v47_v10 = vld [vmem:[#allocation2 + $0x28] sm:$0xff]  ;;  %v49_v13 = vld [vmem:[#allocation2 + $0x38] sm:$0xff]  ;;  %s139_s1 = sshll.u32 %s260_s0, 4  ;;  %s140_s1 = int_to_ptr.vmem [resolvable:$true] %s139_s1 }
  0x17   :  { %185 = vmatprep.subr.bf16.mxu0 %v184_v7  ;;  %v192_v11 = vpack.c.bf16 %v47_v10, %v46_v9  ;;  %v196_v14 = vpack.c.bf16 %v49_v13, %v48_v12  ;;  %s229_s27 = scalar_lea.vmem %s140_s1, 256  ;;  %p234_p9 = scmp.lt.s32.totalorder %s140_s1, %s140_s1 }
  0x18   :  { %187 = vmatpush3.bf16.msra.mxu0 %v184_v7  ;;  %p230_p8 = scmp.ne.s32.totalorder %s140_s1, %s229_s27  ;;  %p235_p10 = scmp.lt.s32.totalorder %s229_s27, %s229_s27 }
  0x19   :  { %34 = vperm.xlu0 %206, %v27_v6   ;;  %189 = vmatprep.subr.bf16.mxu0 %v188_v8 }
  0x1a   :  { %p236_p11 = por %p235_p10, %p234_p9 }
  0x1c   :  { %191 = vmatpush3.bf16.msra.mxu0 %v188_v8  ;;  %p237_p12 = pnand %p236_p11, %p230_p8 }
  0x1d   :  { %193 = vmatprep.subr.bf16.mxu0 %v192_v11 }
  0x20   :  { %195 = vmatpush3.bf16.msra.mxu0 %v192_v11 }
  0x21   :  { %197 = vmatprep.subr.bf16.mxu0 %v196_v14 }
  0x24   :  { %199 = vmatpush3.bf16.msra.mxu0 %v196_v14 }
  0x94   :  { %v32_v17 = vpop.permute.xlu0 %31 }
  0x95   :  { %vm36_vm1 = vcmp.eq.s32.totalorder %v29_v16, %v32_v17 }
  0x96   :  { %v151_v19 = vsel %vm36_vm1, 1.0, %v259_v18 }
  0x97   :  { %181 = vmatprep.mubr.msk.f32.mxu0 %vm50_vm0, %v151_v19 }
  0x98   :  { %v35_v20 = vpop.permute.xlu0 %34 }
  0x99   :  { %vm37_vm2 = vcmp.eq.s32.totalorder %v29_v16, %v35_v20 }
  0x9a   :  { %v152_v21 = vsel %vm37_vm2, 1.0, %v259_v18 }
  0x9b   :  { %182 = vmatmul.mubr.msk.f32.vlgmr.msra.gmra.mrb[0].mxu0 %vm50_vm0, %v152_v21 }
 0x16e   :  { %v183_v22 = vpop.f32.mrb[0].mxu0 }
 0x16f   :  { %133 = vst [vmem:[#allocation5 + $0x8] sm:$0xff] %v183_v22  ;;  %v123_v23 = vpop.f32.mrb[1].mxu0 }
 0x170   :  { %132 = vst [vmem:[#allocation5] sm:$0xff] %v123_v23 }
 0x171   :  { %240 = shalt.err (!%p237_p12)
}
 0x172   :  { %s241_s30 = scalar_lea.hbm %s314_s2, 256 }
 0x173   :  { %p242_p13 = scmp.ne.s32.totalorder %s314_s2, %s241_s30  ;;  %p245_p0 = scmp.lt.u32.totalorder %s241_s30, %s314_s2 }
 0x175   :  { %p247_p1 = pnand %p245_p0, %p242_p13 }
 0x177   :  { %250 = shalt.err (!%p247_p1)
}
 0x178   :  { %145 = dma.vmem_to_hbm [thread:$0]  %s140_s1, 256, %s314_s2, [#allocation4], %s256_s19, %s256_s19, %s257_s20  }
 0x179   :  { %253 = dma.done.wait [#allocation4], 256  }
 0x17a   :  { %254 = vsyncadd [#allocation4], 4294967040 }
 0x17b   :  { %149 = vsyncpa [#allocation3], 1 }
 0x17c   :  { %150 = vsyncpa [#allocation4], 1 }

</bundles_post_ra>
